<compile_context>
chip_gen: v7x
topology: tpu7x:2x2x1
jax: 0.10.0
libtpu: 0.0.40
codegen_flags: <defaults>
</compile_context>

<pallas_src>
import functools

import jax
import jax.numpy as jnp
from jax import lax
from jax.experimental import pallas as pl
from jax.experimental.pallas import tpu as pltpu


def _vq_kernel(x_ref, e_ref, et_ref, hesq_ref,
               q_ref, idx_ref, stats_ref,
               *, num_embeddings, tile_n, valid_hw, needs_mask):
    """One channel-major (D, TILE_N) tile of the VQ forward.

    x_ref     : (1, D, TILE_N)   input tile (channel-major)
    e_ref     : (K, D)           codebook
    et_ref    : (D, K)           codebook transposed (hoisted in wrapper)
    hesq_ref  : (K, 1)           0.5 * per-code squared norms (hoisted in wrapper)
    q_ref     : (1, D, TILE_N)   quantized tile
    idx_ref   : (1, 1, TILE_N)   int32 code indices
    stats_ref : (1, 1, 1, 128)   lane 0 = per-tile sum((q - x)^2), rest zero
    """
    x = x_ref[0]                                  # (D, T) f32
    e = e_ref[...]                                # (K, D)
    e_t = et_ref[...]                             # (D, K)
    half_esq = hesq_ref[...]                      # (K, 1)

    # Reduced distance: d = 0.5*|e|^2 - e@x  (same argmin as |e|^2 + |x|^2 - 2 e@x).
    ex = jnp.dot(e, x, preferred_element_type=jnp.float32)          # (K, T)
    d = half_esq - ex                                               # (K, T)

    # Exact argmin over the codebook axis with first-index tie-break (torch.argmin).
    min_d = jnp.min(d, axis=0, keepdims=True)                       # (1, T)
    row = lax.broadcasted_iota(jnp.int32, d.shape, 0)               # (K, T)
    idx = jnp.min(jnp.where(d <= min_d, row, num_embeddings),
                  axis=0, keepdims=True)                            # (1, T)
    enc = (row == idx).astype(jnp.float32)                          # (K, T)

    # quantized^T = E^T @ one-hot                                   -> (D, T)
    q = jnp.dot(e_t, enc, preferred_element_type=jnp.float32)

    q_ref[0] = q.astype(q_ref.dtype)
    idx_ref[0] = idx

    # Per-tile partial for the commitment loss; lane-dense 128-wide stats row.
    diff = q - x
    col_sq = jnp.sum(diff * diff, axis=0, keepdims=True)            # (1, T)
    if needs_mask:
        col = (pl.program_id(1) * tile_n
               + lax.broadcasted_iota(jnp.int32, col_sq.shape, 1))
        col_sq = jnp.where(col < valid_hw, col_sq, 0.0)
    sqe = jnp.sum(col_sq)
    lane = lax.broadcasted_iota(jnp.int32, (1, 128), 1)
    stats_ref[0, 0] = jnp.where(lane == 0, sqe, 0.0)


def _vmem_capacity_bytes():
    try:
        return int(pltpu.get_tpu_info().vmem_capacity_bytes)
    except Exception:
        return 64 << 20   # conservative (v7x-sized) fallback


def _pick_tile_n(hw_pad, d, k, tile_budget_bytes, require_split):
    """Largest multiple-of-128 divisor of hw_pad within the VMEM tile budget.

    The per-column estimate counts double-buffered x/q/idx blocks plus the
    (K, T)-shaped distance / one-hot temporaries.
    """
    per_col = 4 * (5 * d + 4 * k + 2)
    cap = max(128, (tile_budget_bytes // per_col) // 128 * 128)
    cap = min(cap, 2048)
    if require_split and hw_pad >= 256:
        # keep >= 2 spatial tiles so both v7x TensorCores get work when B == 1
        cap = min(cap, max(128, (hw_pad // 2) // 128 * 128))
    best = 128
    t = 128
    while t <= min(hw_pad, cap):
        if hw_pad % t == 0:
            best = t
        t += 128
    return best


def vector_quantizer_ema_forward(x_nchw, embedding_weight, commitment_cost):
    """Eval-mode forward of VectorQuantizerEMA.

    x_nchw           : (B, C, H, W) float32, C == embedding_dim
    embedding_weight : (K, D) float32 codebook
    returns          : (loss, quantized_nchw, perplexity, encodings)
    """
    B, C, H, W = x_nchw.shape
    K, D = embedding_weight.shape
    assert C == D, "channel dim must equal embedding_dim"
    HW = H * W
    N = B * HW

    # Channel-major: NCHW reshapes (no transpose) to (B, D, HW); pad HW to a
    # multiple of 128 so every block is lane-dense and the VMEM budget applies.
    HW_pad = ((HW + 127) // 128) * 128
    needs_mask = HW_pad != HW
    x3 = x_nchw.reshape(B, D, HW).astype(jnp.float32)
    if needs_mask:
        x3 = jnp.pad(x3, ((0, 0), (0, 0), (0, HW_pad - HW)))

    e = embedding_weight.astype(jnp.float32)
    e_t = e.T                                               # (D, K)  tiny, hoisted
    half_esq = 0.5 * jnp.sum(e * e, axis=1, keepdims=True)  # (K, 1)  hoisted

    # --- generation-aware VMEM plan -------------------------------------------
    vmem_cap = _vmem_capacity_bytes()
    vmem_limit = max(16 << 20, min(48 << 20, int(vmem_cap * 0.55)))

    cb_bytes = 4 * K * D
    single_buffer_codebook = cb_bytes >= (1 << 20)          # only worth it when big
    nbuf_cb = 1 if single_buffer_codebook else 2
    cb_resident = nbuf_cb * 4 * (2 * K * D + K * 128)       # e, e_t, lane-padded hesq
    tile_budget = max(2 << 20, min(16 << 20, (vmem_limit - cb_resident) // 2))

    tile_n = _pick_tile_n(HW_pad, D, K, tile_budget, require_split=(B == 1))
    T = HW_pad // tile_n

    def _codebook_spec(shape):
        if single_buffer_codebook:
            return pl.BlockSpec(shape, lambda b, t: (0, 0),
                                pipeline_mode=pl.Buffered(1))
        return pl.BlockSpec(shape, lambda b, t: (0, 0))

    kernel = functools.partial(
        _vq_kernel, num_embeddings=K, tile_n=tile_n,
        valid_hw=HW, needs_mask=needs_mask)

    out_shapes = (
        jax.ShapeDtypeStruct((B, D, HW_pad), jnp.float32),   # quantized (channel-major)
        jax.ShapeDtypeStruct((B, 1, HW_pad), jnp.int32),     # code indices
        jax.ShapeDtypeStruct((B, T, 1, 128), jnp.float32),   # lane-dense stats row
    )

    n_pad = B * HW_pad
    cost = pl.CostEstimate(
        flops=4 * n_pad * K * D + 8 * n_pad * K,
        transcendentals=0,
        bytes_accessed=(4 * n_pad * (2 * D + 1) + 4 * B * T * 128
                        + nbuf_cb * 4 * (2 * K * D + K)),
    )

    q3, idx, stats = pl.pallas_call(
        kernel,
        out_shape=out_shapes,
        grid_spec=pltpu.PrefetchScalarGridSpec(
            num_scalar_prefetch=0,
            grid=(B, T),
            in_specs=[
                pl.BlockSpec((1, D, tile_n), lambda b, t: (b, 0, t)),
                _codebook_spec((K, D)),
                _codebook_spec((D, K)),
                _codebook_spec((K, 1)),
            ],
            out_specs=[
                pl.BlockSpec((1, D, tile_n), lambda b, t: (b, 0, t)),
                pl.BlockSpec((1, 1, tile_n), lambda b, t: (b, 0, t)),
                pl.BlockSpec((1, 1, 1, 128), lambda b, t: (b, t, 0, 0)),
            ],
        ),
        compiler_params=pltpu.CompilerParams(
            dimension_semantics=("parallel", "parallel"),
            vmem_limit_bytes=vmem_limit),
        cost_estimate=cost,
    )(x3, e, e_t, half_esq)

    # Tiny final reductions in the wrapper (grid stays fully parallel).
    e_latent_loss = jnp.sum(stats[:, :, 0, 0]) / jnp.float32(N * D)
    loss = jnp.float32(commitment_cost) * e_latent_loss

    # Module semantics: dense one-hot encodings in NHWC-flatten order.  (For large
    # N*K callers should prefer the raw `idx` -- the one-hot dominates HBM traffic.)
    idx_valid = idx[:, 0, :HW].reshape(-1)
    encodings = jax.nn.one_hot(idx_valid, K, dtype=jnp.float32)
    avg_probs = jnp.mean(encodings, axis=0)
    perplexity = jnp.exp(-jnp.sum(avg_probs * jnp.log(avg_probs + 1e-10)))

    # Straight-through forward value; channel-major output reshapes straight to NCHW.
    quantized_nchw = q3[:, :, :HW].reshape(B, D, H, W)

    return loss, quantized_nchw, perplexity, encodings


if __name__ == "__main__":
    num_embeddings = 32
    embedding_dim = 4
    commitment_cost = 0.25

    key = jax.random.PRNGKey(0)
    k_x, k_e = jax.random.split(key)

    x = jax.random.normal(k_x, (2, embedding_dim, 16, 16), dtype=jnp.float32)
    embedding_weight = jax.random.normal(
        k_e, (num_embeddings, embedding_dim), dtype=jnp.float32)

    loss, quantized, perplexity, encodings = vector_quantizer_ema_forward(
        x, embedding_weight, commitment_cost)
    jax.block_until_ready((loss, quantized, perplexity, encodings))

    # Pure-JAX reference (NHWC flatten, matching the PyTorch module).
    x_nhwc = jnp.transpose(x, (0, 2, 3, 1))
    flat = x_nhwc.reshape(-1, embedding_dim)
    d_ref = (jnp.sum(flat ** 2, axis=1, keepdims=True)
             + jnp.sum(embedding_weight ** 2, axis=1)
             - 2.0 * flat @ embedding_weight.T)
    idx_ref = jnp.argmin(d_ref, axis=1)
    enc_ref = jax.nn.one_hot(idx_ref, num_embeddings, dtype=jnp.float32)
    q_flat_ref = enc_ref @ embedding_weight
    loss_ref = commitment_cost * jnp.mean((q_flat_ref - flat) ** 2)
    avg_ref = jnp.mean(enc_ref, axis=0)
    perp_ref = jnp.exp(-jnp.sum(avg_ref * jnp.log(avg_ref + 1e-10)))
    q_ref_nchw = jnp.transpose(q_flat_ref.reshape(x_nhwc.shape), (0, 3, 1, 2))

    assert jnp.allclose(encodings, enc_ref)
    assert jnp.allclose(quantized, q_ref_nchw, atol=1e-5)
    assert jnp.allclose(loss, loss_ref, atol=1e-5)
    assert jnp.allclose(perplexity, perp_ref, atol=1e-4)

    print("KERNEL_OK")
</pallas_src>

<mosaic_0001>
module attributes {stable_mosaic.version = 11 : i64} {
  func.func @_vq_kernel(%arg0: i32, %arg1: i32, %arg2: memref<1x4x256xf32, #tpu.memory_space<vmem>>, %arg3: memref<32x4xf32, #tpu.memory_space<vmem>>, %arg4: memref<4x32xf32, #tpu.memory_space<vmem>>, %arg5: memref<32x1xf32, #tpu.memory_space<vmem>>, %arg6: memref<1x4x256xf32, #tpu.memory_space<vmem>>, %arg7: memref<1x1x256xi32, #tpu.memory_space<vmem>>, %arg8: memref<1x1x1x128xf32, #tpu.memory_space<vmem>>) attributes {dimension_semantics = [#tpu.dimension_semantics<parallel>, #tpu.dimension_semantics<parallel>], iteration_bounds = array<i64: 2, 1>, scalar_prefetch = 0 : i64, scratch_operands = 0 : i64, tpu.core_type = #tpu.core_type<tc>, window_params = [{transform_indices = @transform_0, window_bounds = array<i64: 1, 4, 256>}, {pipeline_mode = #tpu.pipeline_mode<synchronous>, transform_indices = @transform_1, window_bounds = array<i64: 32, 4>}, {pipeline_mode = #tpu.pipeline_mode<synchronous>, transform_indices = @transform_2, window_bounds = array<i64: 4, 32>}, {pipeline_mode = #tpu.pipeline_mode<synchronous>, transform_indices = @transform_3, window_bounds = array<i64: 32, 1>}, {transform_indices = @transform_4, window_bounds = array<i64: 1, 4, 256>}, {transform_indices = @transform_5, window_bounds = array<i64: 1, 1, 256>}, {transform_indices = @transform_6, window_bounds = array<i64: 1, 1, 1, 128>}]} {
    %c0 = arith.constant 0 : index
    %c0_0 = arith.constant 0 : index
    %c0_1 = arith.constant 0 : index
    %0 = vector.load %arg2[%c0, %c0_0, %c0_1] : memref<1x4x256xf32, #tpu.memory_space<vmem>>, vector<1x4x256xf32>
    %1 = vector.shape_cast %0 : vector<1x4x256xf32> to vector<4x256xf32>
    %c0_2 = arith.constant 0 : index
    %c0_3 = arith.constant 0 : index
    %2 = vector.load %arg3[%c0_2, %c0_3] : memref<32x4xf32, #tpu.memory_space<vmem>>, vector<32x4xf32>
    %c0_4 = arith.constant 0 : index
    %c0_5 = arith.constant 0 : index
    %3 = vector.load %arg4[%c0_4, %c0_5] : memref<4x32xf32, #tpu.memory_space<vmem>>, vector<4x32xf32>
    %c0_6 = arith.constant 0 : index
    %c0_7 = arith.constant 0 : index
    %4 = vector.load %arg5[%c0_6, %c0_7] : memref<32x1xf32, #tpu.memory_space<vmem>>, vector<32x1xf32>
    %cst = arith.constant dense<0.000000e+00> : vector<32x256xf32>
    %5 = tpu.matmul %2, %1, %cst {dimension_numbers = #tpu.dot_dimension_numbers<[1], [0], [0], [1], [0, 0, 1, 1], [], []>} : vector<32x4xf32>, vector<4x256xf32>, vector<32x256xf32> -> vector<32x256xf32>
    %6 = vector.broadcast %4 : vector<32x1xf32> to vector<32x256xf32>
    %7 = arith.subf %6, %5 : vector<32x256xf32>
    %cst_8 = arith.constant dense<0x7F800000> : vector<256xf32>
    %8 = vector.multi_reduction <minimumf>, %7, %cst_8 [0] : vector<32x256xf32> to vector<256xf32>
    %9 = vector.shape_cast %8 : vector<256xf32> to vector<1x256xf32>
    %10 = tpu.iota {dimensions = array<i32: 0>} : vector<32x256xi32>
    %11 = vector.broadcast %9 : vector<1x256xf32> to vector<32x256xf32>
    %12 = arith.cmpf ole, %7, %11 : vector<32x256xf32>
    %c32_i32 = arith.constant 32 : i32
    %13 = vector.broadcast %c32_i32 : i32 to vector<32x256xi32>
    %14 = arith.select %12, %10, %13 : vector<32x256xi1>, vector<32x256xi32>
    %cst_9 = arith.constant dense<2147483647> : vector<256xi32>
    %15 = vector.multi_reduction <minsi>, %14, %cst_9 [0] : vector<32x256xi32> to vector<256xi32>
    %16 = vector.shape_cast %15 : vector<256xi32> to vector<1x256xi32>
    %17 = vector.broadcast %16 : vector<1x256xi32> to vector<32x256xi32>
    %18 = arith.cmpi eq, %10, %17 : vector<32x256xi32>
    %19 = arith.extui %18 : vector<32x256xi1> to vector<32x256xi32>
    %20 = arith.sitofp %19 : vector<32x256xi32> to vector<32x256xf32>
    %cst_10 = arith.constant dense<0.000000e+00> : vector<4x256xf32>
    %21 = tpu.matmul %3, %20, %cst_10 {dimension_numbers = #tpu.dot_dimension_numbers<[1], [0], [0], [1], [0, 0, 1, 1], [], []>} : vector<4x32xf32>, vector<32x256xf32>, vector<4x256xf32> -> vector<4x256xf32>
    %c0_11 = arith.constant 0 : index
    %c0_12 = arith.constant 0 : index
    %c0_13 = arith.constant 0 : index
    %22 = vector.load %arg6[%c0_11, %c0_12, %c0_13] : memref<1x4x256xf32, #tpu.memory_space<vmem>>, vector<1x4x256xf32>
    %23 = vector.shape_cast %22 : vector<1x4x256xf32> to vector<4x256xf32>
    %24 = vector.shape_cast %21 : vector<4x256xf32> to vector<1x4x256xf32>
    tpu.vector_store %arg6[%c0_11, %c0_12, %c0_13], %24 {strides = array<i32>} : memref<1x4x256xf32, #tpu.memory_space<vmem>>, vector<1x4x256xf32>,
    %c0_14 = arith.constant 0 : index
    %c0_15 = arith.constant 0 : index
    %c0_16 = arith.constant 0 : index
    %25 = vector.load %arg7[%c0_14, %c0_15, %c0_16] : memref<1x1x256xi32, #tpu.memory_space<vmem>>, vector<1x1x256xi32>
    %26 = vector.shape_cast %25 : vector<1x1x256xi32> to vector<1x256xi32>
    %27 = vector.shape_cast %16 : vector<1x256xi32> to vector<1x1x256xi32>
    tpu.vector_store %arg7[%c0_14, %c0_15, %c0_16], %27 {strides = array<i32>} : memref<1x1x256xi32, #tpu.memory_space<vmem>>, vector<1x1x256xi32>,
    %28 = arith.subf %21, %1 : vector<4x256xf32>
    %29 = arith.mulf %28, %28 : vector<4x256xf32>
    %cst_17 = arith.constant dense<0.000000e+00> : vector<256xf32>
    %30 = vector.multi_reduction <add>, %29, %cst_17 [0] : vector<4x256xf32> to vector<256xf32>
    %31 = vector.shape_cast %30 : vector<256xf32> to vector<1x256xf32>
    %32 = vector.shape_cast %31 : vector<1x256xf32> to vector<1x1x256xf32>
    %cst_18 = arith.constant dense<0.000000e+00> : vector<1xf32>
    %33 = vector.multi_reduction <add>, %32, %cst_18 [1, 2] : vector<1x1x256xf32> to vector<1xf32>
    %34 = vector.shape_cast %33 : vector<1xf32> to vector<1x1x1xf32>
    %35 = vector.extract %34[0, 0, 0] : f32 from vector<1x1x1xf32>
    %36 = tpu.iota {dimensions = array<i32: 1>} : vector<1x128xi32>
    %c0_i32 = arith.constant 0 : i32
    %37 = vector.broadcast %c0_i32 : i32 to vector<1x128xi32>
    %38 = arith.cmpi eq, %36, %37 : vector<1x128xi32>
    %cst_19 = arith.constant 0.000000e+00 : f32
    %39 = vector.broadcast %35 : f32 to vector<1x128xf32>
    %40 = vector.broadcast %cst_19 : f32 to vector<1x128xf32>
    %41 = arith.select %38, %39, %40 : vector<1x128xi1>, vector<1x128xf32>
    %c0_20 = arith.constant 0 : index
    %c0_21 = arith.constant 0 : index
    %c0_22 = arith.constant 0 : index
    %c0_23 = arith.constant 0 : index
    %42 = vector.load %arg8[%c0_20, %c0_21, %c0_22, %c0_23] : memref<1x1x1x128xf32, #tpu.memory_space<vmem>>, vector<1x1x1x128xf32>
    %43 = vector.shape_cast %42 : vector<1x1x1x128xf32> to vector<1x128xf32>
    %44 = vector.shape_cast %41 : vector<1x128xf32> to vector<1x1x1x128xf32>
    tpu.vector_store %arg8[%c0_20, %c0_21, %c0_22, %c0_23], %44 {strides = array<i32>} : memref<1x1x1x128xf32, #tpu.memory_space<vmem>>, vector<1x1x1x128xf32>,
    return
  }
  func.func @transform_0(%arg0: i32, %arg1: i32) -> (i32, i32, i32) {
    %c0_i32 = arith.constant 0 : i32
    %c0_i32_0 = arith.constant 0 : i32
    return %arg0, %c0_i32, %arg1 : i32, i32, i32
  }
  func.func @transform_1(%arg0: i32, %arg1: i32) -> (i32, i32) {
    %c0_i32 = arith.constant 0 : i32
    %c0_i32_0 = arith.constant 0 : i32
    %c0_i32_1 = arith.constant 0 : i32
    return %c0_i32, %c0_i32_0 : i32, i32
  }
  func.func @transform_2(%arg0: i32, %arg1: i32) -> (i32, i32) {
    %c0_i32 = arith.constant 0 : i32
    %c0_i32_0 = arith.constant 0 : i32
    %c0_i32_1 = arith.constant 0 : i32
    return %c0_i32, %c0_i32_0 : i32, i32
  }
  func.func @transform_3(%arg0: i32, %arg1: i32) -> (i32, i32) {
    %c0_i32 = arith.constant 0 : i32
    %c0_i32_0 = arith.constant 0 : i32
    %c0_i32_1 = arith.constant 0 : i32
    return %c0_i32, %c0_i32_0 : i32, i32
  }
  func.func @transform_4(%arg0: i32, %arg1: i32) -> (i32, i32, i32) {
    %c0_i32 = arith.constant 0 : i32
    %c0_i32_0 = arith.constant 0 : i32
    return %arg0, %c0_i32, %arg1 : i32, i32, i32
  }
  func.func @transform_5(%arg0: i32, %arg1: i32) -> (i32, i32, i32) {
    %c0_i32 = arith.constant 0 : i32
    %c0_i32_0 = arith.constant 0 : i32
    return %arg0, %c0_i32, %arg1 : i32, i32, i32
  }
  func.func @transform_6(%arg0: i32, %arg1: i32) -> (i32, i32, i32, i32) {
    %c0_i32 = arith.constant 0 : i32
    %c0_i32_0 = arith.constant 0 : i32
    %c0_i32_1 = arith.constant 0 : i32
    return %arg0, %arg1, %c0_i32, %c0_i32_0 : i32, i32, i32, i32
  }
}

</mosaic_0001>

<bundles_post_ra>
// kernel: tpu_custom_call.1
= control target key start
LH: loop header
LB: loop body
LE: loop exit
PB: predicated region body
PF: predicated region fallthrough
CT: control target
= control target key end

     0   :  { %s1449_s0 = inlined_call_operand.vmem [shape: f32[2,4,256], index: 0, kind: input, shape index: {}]   ;;  %s1450_s1 = inlined_call_operand.vmem [shape: f32[32,4], index: 1, kind: input, shape index: {}]   ;;  %s1451_s2 = inlined_call_operand.vmem [shape: f32[4,32], index: 2, kind: input, shape index: {}]   ;;  %s1452_s3 = inlined_call_operand.vmem [shape: f32[32,1], index: 3, kind: input, shape index: {}]   ;;  %s1453_s4 = inlined_call_operand.hbm [shape: f32[2,4,256], index: 4, kind: output, shape index: {0}]   ;;  %s1454_s5 = inlined_call_operand.hbm [shape: s32[2,1,256], index: 5, kind: output, shape index: {1}]   ;;  %s1455_s6 = inlined_call_operand.hbm [shape: f32[2,1,1,128], index: 6, kind: output, shape index: {2}]  }
   0x1   :  { %1457 = sst [smem:[#allocation9_spill]] %s1449_s0 }
   0x2   :  { %1458 = sst [smem:[#allocation10_spill]] %s1450_s1 }
   0x3   :  { %12 = vsyncpa [#allocation3], 0 }
   0x4   :  { %14 = vsyncpa [#allocation3 + $0x1], 0 }
   0x5   :  { %15 = vsyncpa [#allocation5], 0 }
   0x6   :  { %17 = vsyncpa [#allocation5 + $0x1], 0  ;;  %s1182_s21 = smov 0   ;;  %s1184_s22 = smov 0  }
   0x7   :  { %s1186_s23 = smov 0   ;;  %s1188_s24 = smov 0  }
   0x8   :  { %s1190_s25 = smov 0   ;;  %s1192_s26 = smov 0  }
   0x9 LB: > { %s874_s27 = sadd.s32 4294967295, %s1138_s26   ;;  %s1456_s28 = sadd.s32 4294967294, %s1138_s26   ;;  %s1138_s26 = sphi %s1192_s26, %s23_s26   ;;  %s1134_s25 = sphi %s1190_s25, %s1468_s25   ;;  %s1130_s24 = sphi %s1188_s24, %s1467_s24   ;;  %s1126_s23 = sphi %s1186_s23, %s1466_s23   ;;  %s1122_s22 = sphi %s1184_s22, %s1465_s22   ;;  %s1118_s21 = sphi %s1182_s21, %s1464_s21  }
   0xa   : > { %s35_s29 = sadd.s32 1, %s1134_s25  ;;  %s135_s30 = sadd.s32 1, %s1126_s23 }
   0xb   : > { %p37_p0 = scmp.ge.s32.totalorder %s35_s29, 2  ;;  %p145_p1 = scmp.ne.s32.totalorder %s1126_s23, %s1122_s22 }
   0xc   : > { %p146_p2 = scmp.eq.s32.totalorder %s874_s27, 1  ;;  %p151_p3 = scmp.ne.s32.totalorder %s1122_s22, %s1118_s21 }
   0xd   : > { %s1470_s29 = smov (%p37_p0, %s35_s29), 0  ;;  %p152_p5 = scmp.eq.s32.totalorder %s1456_s28, 1 }
   0xe   : > { %p1224_p4 = por %p146_p2, %p145_p1  ;;  %s130_s8 = ssub.s32 %s1134_s25, %s1470_s29 }
   0xf   : > { %p878_p6 = scmp.ge.s32.totalorder %s1138_s26, 1  ;;  %p133_p7 = scmp.eq.s32.totalorder %s130_s8, 0 }
  0x10   : > { %p1233_p8 = por %p152_p5, %p151_p3  ;;  %p248_p9 = scmp.lt.s32.totalorder %s1138_s26, 3 }
  0x11   : > { %s1239_s10 = scalar_select %p133_p7, %s1126_s23, %s135_s30  }
  0x12   : > { %p249_p10 = pnand %p878_p6, %p248_p9 }
  0x13   : > { %p292_p11 = scmp.lt.s32.totalorder (!%p249_p10), %s1130_s24, 1  ;;  %v1140_v0 = vmov (!%p249_p10), 0.0   ;;  %v309_v1 = vld [vmem:[%s1452_s3] sm:$0xff] (!%p249_p10)  ;;  %v1141_v2 = vmov (!%p249_p10), 0   ;;  %v311_v3 = vld [vmem:[%s1452_s3 + $0x10] sm:$0xff] (!%p249_p10)  ;;  %v310_v4 = vld [vmem:[%s1452_s3 + $0x8] sm:$0xff] (!%p249_p10)  ;;  %v468_v39 = vlaneseq (!%p249_p10) }
  0x14   : > { %252 = sbr.rel (%p249_p10) target bundleno = 763 (0x2fb), region = 36  ;;  %397 = vmatprep.mubr.f32.mxu0 (!%p249_p10), %v1140_v0  ;;  %611 = vmatprep.mubr.f32.mxu1 (!%p249_p10), %v1140_v0  ;;  %v312_v5 = vld [vmem:[%s1452_s3 + $0x18] sm:$0xff] (!%p249_p10)  ;;  %s1461_s0 = sld [smem:[#allocation9_spill]] (!%p249_p10)  ;;  %vm328_vm0 = vcmask (!%p249_p10), 1043456   ;;  %vm315_vm1 = vcmask (!%p249_p10), 31744  }
  0x15   : > { %997 = vset.pattern.permute.xlu0 (!%p249_p10), %v1141_v2  ;;  %998 = vset.pattern.permute.xlu1 (!%p249_p10), %v1141_v2  ;;  %s1462_s1 = sld [smem:[#allocation10_spill]] (!%p249_p10)  ;;  %v1281_v44 = vshrl.u32 (!%p249_p10), %v468_v39, 7  ;;  %s1301_s20 = sand.u32 (!%p249_p10), 1, %s1122_s22  }
  0x16   : > { %424 = vperm.xlu0 (!%p249_p10), %997, %v309_v1   ;;  %434 = vperm.xlu1 (!%p249_p10), %998, %v311_v3   ;;  %s880_s30 = sshll.u32 (!%p249_p10), %s1301_s20, 1  ;;  %s1330_s15 = sand.u32 (!%p249_p10), 1, %s874_s27  }
  0x17   : > { %v1284_v49 = vadd.s32 (!%p249_p10), 8, %v1281_v44  ;;  %v1287_v50 = vadd.s32 (!%p249_p10), 16, %v1281_v44  ;;  %v1290_v51 = vadd.s32 (!%p249_p10), 24, %v1281_v44  ;;  %s1317_s12 = scalar_lea.vmem (!%p249_p10), [#allocation4], %s880_s30  ;;  %s916_s8 = sshll.u32 (!%p249_p10), %s1130_s24, 7 }
  0x18   : > { %s723_s30 = sshll.u32 (!%p249_p10), %s1317_s12, 4  ;;  %s1144_s27 = smov (!%p249_p10), [#allocation4]   ;;  %s1339_s30 = int_to_ptr.vmem [resolvable:$true] %s723_s30 }
  0x19   : > { %s1004_s28 = sshll.u32 (!%p249_p10), %s1144_s27, 4  ;;  %s1005_s28 = int_to_ptr.vmem [resolvable:$false] %s1004_s28 }
  0x1a   : > { %429 = vperm.xlu0 (!%p249_p10), %997, %v310_v4   ;;  %439 = vperm.xlu1 (!%p249_p10), %998, %v312_v5   ;;  %p1007_p1 = scmp.lt.s32.totalorder (!%p249_p10), %s1339_s30, %s1005_s28 }
  0x1b   : > { %s293_s13 = scalar_select %p292_p11, %s1130_s24, 1  ;;  %v304_v8 = vld [vmem:[%s1462_s1] sm:$0xff]  ;;  %v305_v9 = vld [vmem:[%s1462_s1 + $0x8] sm:$0xff]  ;;  %v306_v10 = vld [vmem:[%s1462_s1 + $0x10] sm:$0xff] }
  0x1c   : > { %v307_v11 = vld [vmem:[%s1462_s1 + $0x18] sm:$0xff] }
  0x1d   : > { %s915_s16 = sshll.u32 %s293_s13, 3  ;;  %s879_s13 = sshll.u32 %s1301_s20, 3 }
  0x1e   : > { %s299_s11 = scalar_lea.vmem %s1461_s0, %s915_s16  ;;  %s1323_s14 = scalar_lea.vmem [#allocation2], %s879_s13 }
  0x1f   : > { %v1258_v6 = vld [vmem:[%s299_s11] sm:$0xff]  ;;  %s917_s16 = sshll.u32 %s1130_s24, 5  ;;  %s687_s11 = scalar_lea.sflag [#allocation5], %s1330_s15 }
  0x20   : > { %v1262_v7 = vcombine.high %v1258_v6, %v1258_v6  ;;  %s1336_s19 = scalar_lea.hbm %s1454_s5, %s917_s16  ;;  %s1000_s13 = scalar_lea.vmem %s1339_s30, 32 }
  0x21   : > { %p1001_p12 = scmp.ne.s32.totalorder %s1339_s30, %s1000_s13  ;;  %s1006_s0 = scalar_lea.vmem %s1005_s28, 64 }
  0x22   : > { %883 = vmatprep.subr.msk.mxu0 %vm328_vm0, %v1262_v7  ;;  %p1008_p2 = scmp.lt.s32.totalorder %s1006_s0, %s1000_s13 }
  0x23   : > { %884 = vmatpush1.msk.msra.mxu0 %vm328_vm0, %v1258_v6  ;;  %p1002_p13 = pnand %p1001_p12, %p1224_p4 }
  0x24   : > { %885 = vmatmul.mubr.msk.f32.vlgmr.msra.gmra.mrb[0].mxu0 %vm315_vm1, %v304_v8  ;;  %p1009_p3 = por %p1008_p2, %p1007_p1 }
  0x25   : > { %403 = vmatprep.mubr.f32.mxu0 %v1140_v0  ;;  %p1003_p0 = pneg %p1002_p13 }
  0x27   : > { %p1010_p5 = pnand %p1009_p3, %p1003_p0 }
  0x28   : > { %886 = vmatmul.mubr.msk.f32.gmra.mrb[2].mxu0 %vm315_vm1, %v305_v9 }
  0x29   : > { %409 = vmatprep.mubr.f32.mxu0 %v1140_v0 }
  0x2c   : > { %887 = vmatmul.mubr.msk.f32.gmra.mrb[4].mxu0 %vm315_vm1, %v306_v10 }
  0x2d   : > { %415 = vmatprep.mubr.f32.mxu0 %v1140_v0 }
  0x30   : > { %888 = vmatmul.mubr.msk.f32.gmra.mrb[6].mxu0 %vm315_vm1, %v307_v11 }
  0x95   : > { %v425_v14 = vpop.permute.xlu0 %424  ;;  %v435_v17 = vpop.permute.xlu1 %434 }
  0x99   : > { %v430_v23 = vpop.permute.xlu0 %429  ;;  %v440_v26 = vpop.permute.xlu1 %439 }
  0xf7   : > { %v399_v12 = vpop.f32.mrb[0].mxu0 }
  0xf8   : > { %v401_v13 = vpop.f32.mrb[1].mxu0  ;;  %v442_v19 = vsub.f32 %v425_v14, %v399_v12 }
  0xf9   : > { %v443_v22 = vsub.f32 %v425_v14, %v401_v13  ;;  %v1142_v13 = vmov 1966171168  }
  0xfa   : > { %v625_v14 = vunpack.c.l.s4 %v1142_v13 }
  0xfb   : > { %v405_v15 = vpop.f32.mrb[2].mxu0 }
  0xfc   : > { %v407_v16 = vpop.f32.mrb[3].mxu0  ;;  %v444_v29 = vsub.f32 %v430_v23, %v405_v15 }
  0xfd   : > { %v445_v32 = vsub.f32 %v430_v23, %v407_v16 }
  0xff   : > { %v411_v18 = vpop.f32.mrb[4].mxu0 }
 0x100   : > { %v446_v20 = vsub.f32 %v435_v17, %v411_v18  ;;  %v413_v21 = vpop.f32.mrb[5].mxu0  ;;  %v626_v18 = vunpack.c.0.s8 %v625_v14 }
 0x101   : > { %v447_v24 = vsub.f32 %v435_v17, %v413_v21 }
 0x102   : > { %v450_v25 = vmin.f32 %v442_v19, %v446_v20 }
 0x103   : > { %v459_v27 = vmin.f32 %v443_v22, %v447_v24  ;;  %v417_v28 = vpop.f32.mrb[6].mxu0 }
 0x104   : > { %v448_v30 = vsub.f32 %v440_v26, %v417_v28  ;;  %v419_v31 = vpop.f32.mrb[7].mxu0 }
 0x105   : > { %v449_v33 = vsub.f32 %v440_v26, %v419_v31 }
 0x106   : > { %v451_v34 = vmin.f32 %v444_v29, %v448_v30 }
 0x107   : > { %v460_v35 = vmin.f32 %v445_v32, %v449_v33 }
 0x108   : > { %v452_v36 = vmin.f32 %v450_v25, %v451_v34 }
 0x109   : > { %v461_v37 = vmin.f32 %v459_v27, %v460_v35  ;;  %v308_v27 = vld [vmem:[%s1451_s2] sm:$0xf] }
 0x10a   : > { %v453_v38 = vrot.slane %v452_v36, 4 }
 0x10b   : > { %v462_v40 = vrot.slane %v461_v37, 4 }
 0x10c   : > { %v454_v41 = vmin.f32 %v452_v36, %v453_v38 }
 0x10d   : > { %v463_v42 = vmin.f32 %v461_v37, %v462_v40 }
 0x10e   : > { %v455_v43 = vrot.slane %v454_v41, 2 }
 0x10f   : > { %v464_v45 = vrot.slane %v463_v42, 2 }
 0x110   : > { %v456_v46 = vmin.f32 %v454_v41, %v455_v43 }
 0x111   : > { %v465_v47 = vmin.f32 %v463_v42, %v464_v45 }
 0x112   : > { %v457_v48 = vrot.slane %v456_v46, 1 }
 0x113   : > { %v466_v52 = vrot.slane %v465_v47, 1 }
 0x114   : > { %v458_v53 = vmin.f32 %v456_v46, %v457_v48 }
 0x115   : > { %v467_v54 = vmin.f32 %v465_v47, %v466_v52 }
 0x116   : > { %vm473_vm2 = vcmp.le.f32.partialorder %v442_v19, %v458_v53  ;;  %vm475_vm3 = vcmp.le.f32.partialorder %v444_v29, %v458_v53  ;;  %vm477_vm4 = vcmp.le.f32.partialorder %v446_v20, %v458_v53  ;;  %vm479_vm5 = vcmp.le.f32.partialorder %v448_v30, %v458_v53 }
 0x117   : > { %v481_v55 = vsel %vm473_vm2, %v1281_v44, 32  ;;  %v483_v56 = vsel %vm475_vm3, %v1284_v49, 32  ;;  %v485_v57 = vsel %vm477_vm4, %v1287_v50, 32  ;;  %v487_v58 = vsel %vm479_vm5, %v1290_v51, 32 }
 0x118   : > { %vm489_vm6 = vcmp.lt.s32.totalorder %v481_v55, %v485_v57  ;;  %vm491_vm7 = vcmp.lt.s32.totalorder %v483_v56, %v487_v58  ;;  %vm474_vm8 = vcmp.le.f32.partialorder %v443_v22, %v467_v54  ;;  %vm476_vm9 = vcmp.le.f32.partialorder %v445_v32, %v467_v54 }
 0x119   : > { %v490_v59 = vsel %vm489_vm6, %v481_v55, %v485_v57  ;;  %v492_v60 = vsel %vm491_vm7, %v483_v56, %v487_v58  ;;  %vm478_vm10 = vcmp.le.f32.partialorder %v447_v24, %v467_v54  ;;  %vm480_vm11 = vcmp.le.f32.partialorder %v449_v33, %v467_v54 }
 0x11a   : > { %vm493_vm12 = vcmp.lt.s32.totalorder %v490_v59, %v492_v60  ;;  %v482_v61 = vsel %vm474_vm8, %v1281_v44, 32  ;;  %v484_v62 = vsel %vm476_vm9, %v1284_v49, 32  ;;  %v486_v63 = vsel %vm478_vm10, %v1287_v50, 32 }
 0x11b   : > { %v494_v0 = vsel %vm493_vm12, %v490_v59, %v492_v60  ;;  %v488_v1 = vsel %vm480_vm11, %v1290_v51, 32  ;;  %vm504_vm13 = vcmp.lt.s32.totalorder %v482_v61, %v486_v63  ;;  %v629_v22 = vsub.s32 %v626_v18, %v1281_v44 }
 0x11c   : > { %v495_v2 = vrot.slane %v494_v0, 4  ;;  %v505_v3 = vsel %vm504_vm13, %v482_v61, %v486_v63  ;;  %vm506_vm14 = vcmp.lt.s32.totalorder %v484_v62, %v488_v1  ;;  %v1143_v24 = vmov 1.0|1.0  }
 0x11d   : > { %v507_v4 = vsel %vm506_vm14, %v484_v62, %v488_v1 }
 0x11e   : > { %vm496_vm15 = vcmp.lt.s32.totalorder %v494_v0, %v495_v2  ;;  %vm508_vm1 = vcmp.lt.s32.totalorder %v505_v3, %v507_v4 }
 0x11f   : > { %v497_v5 = vsel %vm496_vm15, %v494_v0, %v495_v2  ;;  %v509_v8 = vsel %vm508_vm1, %v505_v3, %v507_v4 }
 0x120   : > { %v498_v9 = vrot.slane %v497_v5, 2  ;;  %v510_v10 = vrot.slane %v509_v8, 4 }
 0x122   : > { %vm499_vm2 = vcmp.lt.s32.totalorder %v497_v5, %v498_v9  ;;  %vm511_vm3 = vcmp.lt.s32.totalorder %v509_v8, %v510_v10 }
 0x123   : > { %v512_v11 = vsel %vm511_vm3, %v509_v8, %v510_v10  ;;  %v500_v12 = vsel %vm499_vm2, %v497_v5, %v498_v9  ;;  %vm640_vm3 = vcmp.lt.s32.totalorder %v468_v39, 256 }
 0x124   : > { %v513_v15 = vrot.slane %v512_v11, 2  ;;  %v501_v16 = vrot.slane %v500_v12, 1 }
 0x126   : > { %vm514_vm4 = vcmp.lt.s32.totalorder %v512_v11, %v513_v15  ;;  %vm502_vm5 = vcmp.lt.s32.totalorder %v500_v12, %v501_v16 }
 0x127   : > { %v515_v17 = vsel %vm514_vm4, %v512_v11, %v513_v15  ;;  %v503_v20 = vsel %vm502_vm5, %v500_v12, %v501_v16  ;;  %vm543_vm5 = vcmask 261120  }
 0x128   : > { %v516_v19 = vrot.slane %v515_v17, 1  ;;  %vm519_vm7 = vcmp.eq.s32.totalorder %v1281_v44, %v503_v20  ;;  %vm521_vm8 = vcmp.eq.s32.totalorder %v1284_v49, %v503_v20  ;;  %vm523_vm1 = vcmp.eq.s32.totalorder %v1287_v50, %v503_v20 }
 0x129   : > { %vm920_vm14 = vmpackc.low %vm521_vm8, %vm519_vm7  ;;  %vm525_vm2 = vcmp.eq.s32.totalorder %v1290_v51, %v503_v20 }
 0x12a   : > { %vm517_vm6 = vcmp.lt.s32.totalorder %v515_v17, %v516_v19  ;;  %vm924_vm4 = vmpackc.low %vm525_vm2, %vm523_vm1 }
 0x12b   : > { %v518_v21 = vsel %vm517_vm6, %v515_v17, %v516_v19  ;;  %vm662_vm6 = vcmask 1040384  }
 0x12c   : > { %vm520_vm9 = vcmp.eq.s32.totalorder %v1281_v44, %v518_v21  ;;  %vm522_vm10 = vcmp.eq.s32.totalorder %v1284_v49, %v518_v21  ;;  %vm524_vm11 = vcmp.eq.s32.totalorder %v1287_v50, %v518_v21  ;;  %vm526_vm12 = vcmp.eq.s32.totalorder %v1290_v51, %v518_v21 }
 0x12d   : > { %vm918_vm13 = vmpackc.low %vm522_vm10, %vm520_vm9  ;;  %v623_v23 = vcombine.low %v503_v20, %v518_v21 }
 0x12e   : > { %919 = vmatprep.subr.msk.bf16.mxu1 %vm918_vm13, %v1143_v24  ;;  %vm922_vm15 = vmpackc.low %vm526_vm12, %vm524_vm11 }
 0x12f   : > { %921 = vmatpush1.bf16.msk.msra.mxu1 %vm920_vm14, %v1143_v24  ;;  %v630_v25 = vrot.slane %v623_v23, %v629_v22 }
 0x130   : > { %923 = vmatprep.subr.msk.bf16.mxu1 %vm922_vm15, %v1143_v24 }
 0x131   : > { %v637_v26 = vrot.slane %v630_v25, %v629_v22 }
 0x133   : > { %925 = vmatpush1.bf16.msk.msra.mxu1 %vm924_vm4, %v1143_v24  ;;  %642 = vst.msk [vmem:[%s1317_s12] sm:$0x3] %vm640_vm3, %v637_v26 }
 0x136   : > { %905 = vmatmul.mubr.msk.f32.vlgmr.msra.gmra.mrb[0].mxu1 %vm543_vm5, %v308_v27 }
 0x209   : > { %v613_v28 = vpop.f32.mrb[0].mxu1 }
 0x20a   : > { %v644_v29 = vsub.f32 %v613_v28, %v1258_v6  ;;  %v615_v30 = vpop.f32.mrb[1].mxu1 }
 0x20b   : > { %v620_v31 = vcombine.low %v613_v28, %v615_v30  ;;  %v645_v32 = vsub.f32 %v615_v30, %v1262_v7 }
 0x20c   : > { %v646_v33 = vmul.f32 %v644_v29, %v644_v29 }
 0x20d   : > { %622 = vst [vmem:[%s1323_s14] sm:$0xff] %v620_v31  ;;  %v647_v34 = vmul.f32 %v645_v32, %v645_v32 }
 0x20e   : > { %v648_v35 = vsel %vm328_vm0, %v646_v33, 0.0 }
 0x20f   : > { %v649_v36 = vrot.slane %v648_v35, 4  ;;  %v655_v37 = vsel %vm328_vm0, %v647_v34, 0.0 }
 0x210   : > { %v656_v38 = vrot.slane %v655_v37, 4 }
 0x211   : > { %v650_v40 = vadd.f32 %v649_v36, %v648_v35 }
 0x212   : > { %v657_v6 = vadd.f32 %v656_v38, %v655_v37 }
 0x213   : > { %v651_v41 = vrot.slane %v650_v40, 2 }
 0x214   : > { %v658_v42 = vrot.slane %v657_v6, 2 }
 0x215   : > { %v652_v7 = vadd.f32 %v651_v41, %v650_v40 }
 0x216   : > { %v659_v43 = vadd.f32 %v658_v42, %v657_v6 }
 0x217   : > { %v653_v44 = vrot.slane %v652_v7, 1 }
 0x218   : > { %v660_v45 = vrot.slane %v659_v43, 1 }
 0x219   : > { %v654_v46 = vadd.f32 %v653_v44, %v652_v7 }
 0x21a   : > { %v661_v47 = vadd.f32 %v660_v45, %v659_v43 }
 0x21b   : > { %v663_v48 = vsel %vm662_vm6, %v654_v46, 0.0 }
 0x21c   : > { %v664_v49 = vsel %vm662_vm6, %v661_v47, 0.0 }
 0x21d   : > { %v665_v50 = vadd.f32 %v664_v49, %v663_v48 }
 0x21f   : > { %666 = vadd.xlane.f32.xlu0 %v665_v50 }
 0x220   : > { %1013 = shalt.err (!%p1010_p5)
}
 0x221   : > { %s1014_s12 = scalar_lea.hbm %s1336_s19, 32  ;;  %s1018_s18 = scalar_lea.hbm %s1454_s5, 64 }
 0x222   : > { %p1015_p6 = scmp.ne.s32.totalorder %s1336_s19, %s1014_s12  ;;  %p1019_p10 = scmp.lt.u32.totalorder %s1336_s19, %s1454_s5 }
 0x223   : > { %p1020_p11 = scmp.lt.u32.totalorder %s1018_s18, %s1014_s12  ;;  %p1022_p13 = scmp.lt.u32.totalorder %s1014_s12, %s1336_s19 }
 0x224   : > { %p1016_p7 = pnand %p1015_p6, %p1224_p4 }
 0x225   : > { %p1021_p12 = por %p1020_p11, %p1019_p10 }
 0x226   : > { %p1017_p9 = pneg %p1016_p7 }
 0x227   : > { %p1023_p0 = por %p1022_p13, %p1021_p12 }
 0x229   : > { %p1024_p1 = pnand %p1023_p0, %p1017_p9 }
 0x22b   : > { %1027 = shalt.err (!%p1024_p1)
}
 0x22c   : > { %929 = dma.vmem_to_hbm [thread:$0]  (%p1224_p4), %s1339_s30, 32, %s1336_s19, %s687_s11  }
 0x22d   : > { %s1371_s16 = scalar_lea.hbm %s1453_s4, %s916_s8  ;;  %s707_s12 = sshll.u32 %s1323_s14, 4  ;;  %s708_s12 = int_to_ptr.vmem [resolvable:$true] %s707_s12 }
 0x22e   : > { %s682_s17 = scalar_lea.sflag [#allocation3], %s1301_s20  ;;  %s1028_s18 = scalar_lea.vmem %s708_s12, 128 }
 0x22f   : > { %p1029_p2 = scmp.ne.s32.totalorder %s708_s12, %s1028_s18  ;;  %s1145_s27 = smov [#allocation2]  }
 0x230   : > { %s1032_s28 = sshll.u32 %s1145_s27, 4  ;;  %s1033_s28 = int_to_ptr.vmem [resolvable:$false] %s1032_s28 }
 0x231   : > { %p1030_p3 = pnand %p1029_p2, %p1224_p4  ;;  %s1034_s1 = scalar_lea.vmem %s1033_s28, 256 }
 0x232   : > { %p1035_p6 = scmp.lt.s32.totalorder %s708_s12, %s1033_s28  ;;  %p1036_p7 = scmp.lt.s32.totalorder %s1034_s1, %s1028_s18 }
 0x233   : > { %p1031_p5 = pneg %p1030_p3 }
 0x234   : > { %p1037_p9 = por %p1036_p7, %p1035_p6 }
 0x236   : > { %p1038_p10 = pnand %p1037_p9, %p1031_p5 }
 0x238   : > { %1041 = shalt.err (!%p1038_p10)
}
 0x239   : > { %s1042_s14 = scalar_lea.hbm %s1371_s16, 128  ;;  %s1046_s8 = scalar_lea.hbm %s1453_s4, 256 }
 0x23a   : > { %p1043_p11 = scmp.ne.s32.totalorder %s1371_s16, %s1042_s14  ;;  %p1047_p0 = scmp.lt.u32.totalorder %s1371_s16, %s1453_s4 }
 0x23b   : > { %p1048_p1 = scmp.lt.u32.totalorder %s1046_s8, %s1042_s14  ;;  %p1050_p3 = scmp.lt.u32.totalorder %s1042_s14, %s1371_s16 }
 0x23c   : > { %p1044_p12 = pnand %p1043_p11, %p1224_p4 }
 0x23d   : > { %p1049_p2 = por %p1048_p1, %p1047_p0 }
 0x23e   : > { %p1045_p13 = pneg %p1044_p12 }
 0x23f   : > { %p1051_p5 = por %p1050_p3, %p1049_p2 }
 0x241   : > { %p1052_p6 = pnand %p1051_p5, %p1045_p13 }
 0x243   : > { %1055 = shalt.err (!%p1052_p6)
}
 0x244   : > { %928 = dma.vmem_to_hbm [thread:$0]  (%p1224_p4), %s708_s12, 128, %s1371_s16, %s682_s17   ;;  %v676_v58 = vand.u32 127, %v468_v39 }
 0x245   : > { %s290_s1 = scalar_lea.vmem [#allocation6], %s1301_s20  ;;  %s912_s27 = sshll.u32 %s1130_s24, 4 }
 0x246   : > { %s737_s18 = sshll.u32 %s290_s1, 4  ;;  %vm677_vm0 = vcmp.eq.s32.totalorder %v676_v58, 0  ;;  %s1400_s17 = scalar_lea.hbm %s1455_s6, %s912_s27  ;;  %s1395_s18 = int_to_ptr.vmem [resolvable:$true] %s737_s18 }
 0x247   : > { %s1056_s14 = scalar_lea.vmem %s1395_s18, 16  ;;  %s1146_s24 = smov [#allocation6]  }
 0x248   : > { %p1057_p7 = scmp.ne.s32.totalorder %s1395_s18, %s1056_s14  ;;  %s1060_s20 = sshll.u32 %s1146_s24, 4  ;;  %s1061_s20 = int_to_ptr.vmem [resolvable:$false] %s1060_s20 }
 0x249   : > { %s1062_s19 = scalar_lea.vmem %s1061_s20, 32  ;;  %p1063_p11 = scmp.lt.s32.totalorder %s1395_s18, %s1061_s20 }
 0x24a   : > { %p1058_p9 = pnand %p1057_p7, %p1224_p4  ;;  %p1064_p12 = scmp.lt.s32.totalorder %s1062_s19, %s1056_s14 }
 0x24c   : > { %p1059_p10 = pneg %p1058_p9  ;;  %p1065_p13 = por %p1064_p12, %p1063_p11 }
 0x24e   : > { %p1066_p0 = pnand %p1065_p13, %p1059_p10 }
 0x2ac   : > { %v667_v51 = vpop.xlane.xlu0 %666 }
 0x2ad   : > { %v668_v52 = vrot.slane %v667_v51, 4 }
 0x2af   : > { %v669_v53 = vadd.f32 %v668_v52, %v667_v51 }
 0x2b1   : > { %v670_v54 = vrot.slane %v669_v53, 2 }
 0x2b3   : > { %v671_v55 = vadd.f32 %v670_v54, %v669_v53 }
 0x2b5   : > { %v672_v56 = vrot.slane %v671_v55, 1 }
 0x2b7   : > { %v673_v57 = vadd.f32 %v672_v56, %v671_v55 }
 0x2b9   : > { %926 = vpush %v673_v57 }
 0x2ea   : > { %s927_s28 = spop %926 }
 0x2eb   : > { %v678_v59 = vstv %s927_s28 }
 0x2ec   : > { %v679_v60 = vsel %vm677_vm0, %v678_v59, 0.0 }
 0x2ed   : > { %680 = vst [vmem:[%s290_s1] sm:$0x1] %v679_v60 }
 0x2ee   : > { %1069 = shalt.err (!%p1066_p0)
}
 0x2ef   : > { %s1070_s30 = scalar_lea.hbm %s1400_s17, 16  ;;  %s1074_s13 = scalar_lea.hbm %s1455_s6, 32 }
 0x2f0   : > { %p1071_p1 = scmp.ne.s32.totalorder %s1400_s17, %s1070_s30  ;;  %p1075_p5 = scmp.lt.u32.totalorder %s1400_s17, %s1455_s6 }
 0x2f1   : > { %p1076_p6 = scmp.lt.u32.totalorder %s1074_s13, %s1070_s30  ;;  %p1078_p9 = scmp.lt.u32.totalorder %s1070_s30, %s1400_s17 }
 0x2f2   : > { %p1072_p2 = pnand %p1071_p1, %p1224_p4 }
 0x2f3   : > { %p1077_p7 = por %p1076_p6, %p1075_p5 }
 0x2f4   : > { %p1073_p3 = pneg %p1072_p2 }
 0x2f5   : > { %p1079_p10 = por %p1078_p9, %p1077_p7 }
 0x2f7   : > { %p1080_p11 = pnand %p1079_p10, %p1073_p3 }
 0x2f9   : > { %1083 = shalt.err (!%p1080_p11)
}
 0x2fa   : > { %930 = dma.vmem_to_hbm [thread:$0]  (%p1224_p4), %s1395_s18, 16, %s1400_s17, %s687_s11  }
 0x2fb PF: > { %p944_p12 = scmp.ge.s32.totalorder %s1138_s26, 2  ;;  %s749_s28 = sand.u32 1, %s1118_s21  }
 0x2fc   : > { %s750_s16 = scalar_lea.sflag [#allocation3], %s749_s28 }
 0x2fd   : > { %p935_p13 = pnand %p944_p12, %p1233_p8 }
 0x2ff   : > { %1109 = dma.done.wait (!%p935_p13), %s750_s16, 128  }
 0x300   : > { %1111 = vsyncadd (!%p935_p13), %s750_s16, 4294967168  ;;  %s1463_s12 = sadd.s32 4294967294, %s1138_s26  }
 0x301   : > { %s758_s14 = sand.u32 1, %s1463_s12  }
 0x302   : > { %s759_s7 = scalar_lea.sflag [#allocation5], %s758_s14 }
 0x303   : > { %1113 = dma.done.wait (!%p935_p13), %s759_s7, 48  }
 0x304   : > { %1115 = vsyncadd (!%p935_p13), %s759_s7, 4294967248  ;;  %s23_s26 = sadd.s32 1, %s1138_s26   ;;  %s1464_s21 = smov %s1122_s22 }
 0x305   : > { %p20_p4 = scmp.ge.s32.totalorder %s23_s26, 4   ;;  %s1465_s22 = smov %s1126_s23 }
 0x306   : > { %s1466_s23 = smov %s1239_s10  ;;  %s1467_s24 = smov %s1134_s25 }
 0x307   : > { %s1468_s25 = smov %s1470_s29  ;;  %22 = sbr.rel (!%p20_p4) target bundleno = 9 (0x9), region = 103 }
 0x30e   :  { %772 = vsyncpa [#allocation3], 1 }
 0x30f   :  { %774 = vsyncpa [#allocation3 + $0x1], 1 }
 0x310   :  { %775 = vsyncpa [#allocation5], 1 }
 0x311   :  { %777 = vsyncpa [#allocation5 + $0x1], 1 }

</bundles_post_ra>
